<compile_context>
chip_gen: v7x
topology: tpu7x:2x2x1
jax: 0.10.0
libtpu: 0.0.40
codegen_flags: <defaults>
</compile_context>

<pallas_src>
import jax
import jax.numpy as jnp
from jax import lax
from jax.experimental import pallas as pl
from jax.experimental.pallas import tpu as pltpu


def _td_linear_kernel(x_ref, w_ref, b_ref, o_ref):
    # x_ref: (B, T, D_in)       inputs, unchanged layout
    # w_ref: (T, D_out, D_in)   compact torch nn.Linear weights (no transpose, no block-diag)
    # b_ref: (T, D_out)         per-timestep biases
    # o_ref: (B, T*D_out)       packed, lane-dense output slab
    T, D_out, _ = w_ref.shape
    for t in range(T):  # static unroll, T is small
        x_t = x_ref[:, t, :]                                  # (B, D_in)
        # Contract directly against the torch layout: y_t = x_t @ W[t].T
        y_t = lax.dot_general(
            x_t, w_ref[t],
            dimension_numbers=(((1,), (1,)), ((), ())),
            preferred_element_type=jnp.float32,
        )                                                     # (B, D_out)
        y_t = y_t + b_ref[t:t + 1, :]                         # (1, D_out) broadcast
        # VMEM-only 32-lane store; the HBM writeback is the whole 256-lane slab.
        o_ref[:, t * D_out:(t + 1) * D_out] = y_t.astype(o_ref.dtype)


def time_distributed_linear(x, weights, biases):
    """TimeDistributed(nn.Linear): out[:, t, :] = x[:, t, :] @ weights[t].T + biases[t].

    x:       (B, T, D_in)
    weights: (T, D_out, D_in)  (torch nn.Linear layout, one independent Linear per timestep)
    biases:  (T, D_out)
    returns: (B, T, D_out)
    """
    B, T, D_in = x.shape
    D_out = weights.shape[1]
    itemsize = jnp.dtype(x.dtype).itemsize

    out_flat = pl.pallas_call(
        _td_linear_kernel,
        out_shape=jax.ShapeDtypeStruct((B, T * D_out), x.dtype),
        in_specs=[
            pl.BlockSpec(memory_space=pltpu.MemorySpace.VMEM),  # x
            pl.BlockSpec(memory_space=pltpu.MemorySpace.VMEM),  # weights (compact)
            pl.BlockSpec(memory_space=pltpu.MemorySpace.VMEM),  # biases
        ],
        out_specs=pl.BlockSpec(memory_space=pltpu.MemorySpace.VMEM),
        cost_estimate=pl.CostEstimate(
            flops=2 * B * T * D_in * D_out,
            transcendentals=0,
            bytes_accessed=(x.size + weights.size + biases.size + B * T * D_out) * itemsize,
        ),
    )(x, weights, biases)

    return out_flat.reshape(B, T, D_out)  # contiguous reshape (free)


if __name__ == "__main__":
    # Small shapes consistent with the module: batch=2, time_steps=8, hidden=32.
    B, T, D_in, D_out = 2, 8, 32, 32

    key = jax.random.PRNGKey(0)
    kx, kw, kb = jax.random.split(key, 3)

    x = jax.random.normal(kx, (B, T, D_in), dtype=jnp.float32)
    # One independent Linear per time step (deterministic init, torch layout).
    weights = jax.random.normal(kw, (T, D_out, D_in), dtype=jnp.float32) * 0.1
    biases = jax.random.normal(kb, (T, D_out), dtype=jnp.float32) * 0.1

    out = jax.block_until_ready(time_distributed_linear(x, weights, biases))

    # Reference check (plain JAX) to confirm per-timestep Linear semantics.
    ref = jnp.stack(
        [x[:, t, :] @ weights[t].T + biases[t] for t in range(T)], axis=1
    )
    assert out.shape == (B, T, D_out)
    assert jnp.allclose(out, ref, atol=1e-5, rtol=1e-5)

    print("KERNEL_OK")
</pallas_src>

<mosaic_0001>
module attributes {stable_mosaic.version = 11 : i64} {
  func.func @_td_linear_kernel(%arg0: memref<2x8x32xf32, #tpu.memory_space<vmem>>, %arg1: memref<8x32x32xf32, #tpu.memory_space<vmem>>, %arg2: memref<8x32xf32, #tpu.memory_space<vmem>>, %arg3: memref<2x256xf32, #tpu.memory_space<vmem>>) attributes {dimension_semantics = [], scalar_prefetch = 0 : i64, scratch_operands = 0 : i64, tpu.core_type = #tpu.core_type<tc>} {
    %c0 = arith.constant 0 : index
    %c0_0 = arith.constant 0 : index
    %c0_1 = arith.constant 0 : index
    %0 = vector.load %arg0[%c0, %c0_0, %c0_1] : memref<2x8x32xf32, #tpu.memory_space<vmem>>, vector<2x1x32xf32>
    %1 = vector.shape_cast %0 : vector<2x1x32xf32> to vector<2x32xf32>
    %c0_2 = arith.constant 0 : index
    %c0_3 = arith.constant 0 : index
    %c0_4 = arith.constant 0 : index
    %2 = vector.load %arg1[%c0_2, %c0_3, %c0_4] : memref<8x32x32xf32, #tpu.memory_space<vmem>>, vector<1x32x32xf32>
    %3 = vector.shape_cast %2 : vector<1x32x32xf32> to vector<32x32xf32>
    %cst = arith.constant dense<0.000000e+00> : vector<2x32xf32>
    %4 = tpu.matmul %1, %3, %cst {dimension_numbers = #tpu.dot_dimension_numbers<[1], [1], [0], [0], [0, 0, 1, 0], [], []>} : vector<2x32xf32>, vector<32x32xf32>, vector<2x32xf32> -> vector<2x32xf32>
    %c0_5 = arith.constant 0 : index
    %c0_6 = arith.constant 0 : index
    %5 = vector.load %arg2[%c0_5, %c0_6] : memref<8x32xf32, #tpu.memory_space<vmem>>, vector<1x32xf32>
    %6 = vector.broadcast %5 : vector<1x32xf32> to vector<2x32xf32>
    %7 = arith.addf %4, %6 : vector<2x32xf32>
    %c0_7 = arith.constant 0 : index
    %c0_8 = arith.constant 0 : index
    %8 = vector.load %arg3[%c0_7, %c0_8] : memref<2x256xf32, #tpu.memory_space<vmem>>, vector<2x32xf32>
    tpu.vector_store %arg3[%c0_7, %c0_8], %7 {strides = array<i32>} : memref<2x256xf32, #tpu.memory_space<vmem>>, vector<2x32xf32>,
    %c0_9 = arith.constant 0 : index
    %c1 = arith.constant 1 : index
    %c0_10 = arith.constant 0 : index
    %9 = vector.load %arg0[%c0_9, %c1, %c0_10] : memref<2x8x32xf32, #tpu.memory_space<vmem>>, vector<2x1x32xf32>
    %10 = vector.shape_cast %9 : vector<2x1x32xf32> to vector<2x32xf32>
    %c1_11 = arith.constant 1 : index
    %c0_12 = arith.constant 0 : index
    %c0_13 = arith.constant 0 : index
    %11 = vector.load %arg1[%c1_11, %c0_12, %c0_13] : memref<8x32x32xf32, #tpu.memory_space<vmem>>, vector<1x32x32xf32>
    %12 = vector.shape_cast %11 : vector<1x32x32xf32> to vector<32x32xf32>
    %cst_14 = arith.constant dense<0.000000e+00> : vector<2x32xf32>
    %13 = tpu.matmul %10, %12, %cst_14 {dimension_numbers = #tpu.dot_dimension_numbers<[1], [1], [0], [0], [0, 0, 1, 0], [], []>} : vector<2x32xf32>, vector<32x32xf32>, vector<2x32xf32> -> vector<2x32xf32>
    %c1_15 = arith.constant 1 : index
    %c0_16 = arith.constant 0 : index
    %14 = vector.load %arg2[%c1_15, %c0_16] : memref<8x32xf32, #tpu.memory_space<vmem>>, vector<1x32xf32>
    %15 = vector.broadcast %14 : vector<1x32xf32> to vector<2x32xf32>
    %16 = arith.addf %13, %15 : vector<2x32xf32>
    %c0_17 = arith.constant 0 : index
    %c32 = arith.constant 32 : index
    %17 = vector.load %arg3[%c0_17, %c32] : memref<2x256xf32, #tpu.memory_space<vmem>>, vector<2x32xf32>
    tpu.vector_store %arg3[%c0_17, %c32], %16 {strides = array<i32>} : memref<2x256xf32, #tpu.memory_space<vmem>>, vector<2x32xf32>,
    %c0_18 = arith.constant 0 : index
    %c2 = arith.constant 2 : index
    %c0_19 = arith.constant 0 : index
    %18 = vector.load %arg0[%c0_18, %c2, %c0_19] : memref<2x8x32xf32, #tpu.memory_space<vmem>>, vector<2x1x32xf32>
    %19 = vector.shape_cast %18 : vector<2x1x32xf32> to vector<2x32xf32>
    %c2_20 = arith.constant 2 : index
    %c0_21 = arith.constant 0 : index
    %c0_22 = arith.constant 0 : index
    %20 = vector.load %arg1[%c2_20, %c0_21, %c0_22] : memref<8x32x32xf32, #tpu.memory_space<vmem>>, vector<1x32x32xf32>
    %21 = vector.shape_cast %20 : vector<1x32x32xf32> to vector<32x32xf32>
    %cst_23 = arith.constant dense<0.000000e+00> : vector<2x32xf32>
    %22 = tpu.matmul %19, %21, %cst_23 {dimension_numbers = #tpu.dot_dimension_numbers<[1], [1], [0], [0], [0, 0, 1, 0], [], []>} : vector<2x32xf32>, vector<32x32xf32>, vector<2x32xf32> -> vector<2x32xf32>
    %c2_24 = arith.constant 2 : index
    %c0_25 = arith.constant 0 : index
    %23 = vector.load %arg2[%c2_24, %c0_25] : memref<8x32xf32, #tpu.memory_space<vmem>>, vector<1x32xf32>
    %24 = vector.broadcast %23 : vector<1x32xf32> to vector<2x32xf32>
    %25 = arith.addf %22, %24 : vector<2x32xf32>
    %c0_26 = arith.constant 0 : index
    %c64 = arith.constant 64 : index
    %26 = vector.load %arg3[%c0_26, %c64] : memref<2x256xf32, #tpu.memory_space<vmem>>, vector<2x32xf32>
    tpu.vector_store %arg3[%c0_26, %c64], %25 {strides = array<i32>} : memref<2x256xf32, #tpu.memory_space<vmem>>, vector<2x32xf32>,
    %c0_27 = arith.constant 0 : index
    %c3 = arith.constant 3 : index
    %c0_28 = arith.constant 0 : index
    %27 = vector.load %arg0[%c0_27, %c3, %c0_28] : memref<2x8x32xf32, #tpu.memory_space<vmem>>, vector<2x1x32xf32>
    %28 = vector.shape_cast %27 : vector<2x1x32xf32> to vector<2x32xf32>
    %c3_29 = arith.constant 3 : index
    %c0_30 = arith.constant 0 : index
    %c0_31 = arith.constant 0 : index
    %29 = vector.load %arg1[%c3_29, %c0_30, %c0_31] : memref<8x32x32xf32, #tpu.memory_space<vmem>>, vector<1x32x32xf32>
    %30 = vector.shape_cast %29 : vector<1x32x32xf32> to vector<32x32xf32>
    %cst_32 = arith.constant dense<0.000000e+00> : vector<2x32xf32>
    %31 = tpu.matmul %28, %30, %cst_32 {dimension_numbers = #tpu.dot_dimension_numbers<[1], [1], [0], [0], [0, 0, 1, 0], [], []>} : vector<2x32xf32>, vector<32x32xf32>, vector<2x32xf32> -> vector<2x32xf32>
    %c3_33 = arith.constant 3 : index
    %c0_34 = arith.constant 0 : index
    %32 = vector.load %arg2[%c3_33, %c0_34] : memref<8x32xf32, #tpu.memory_space<vmem>>, vector<1x32xf32>
    %33 = vector.broadcast %32 : vector<1x32xf32> to vector<2x32xf32>
    %34 = arith.addf %31, %33 : vector<2x32xf32>
    %c0_35 = arith.constant 0 : index
    %c96 = arith.constant 96 : index
    %35 = vector.load %arg3[%c0_35, %c96] : memref<2x256xf32, #tpu.memory_space<vmem>>, vector<2x32xf32>
    tpu.vector_store %arg3[%c0_35, %c96], %34 {strides = array<i32>} : memref<2x256xf32, #tpu.memory_space<vmem>>, vector<2x32xf32>,
    %c0_36 = arith.constant 0 : index
    %c4 = arith.constant 4 : index
    %c0_37 = arith.constant 0 : index
    %36 = vector.load %arg0[%c0_36, %c4, %c0_37] : memref<2x8x32xf32, #tpu.memory_space<vmem>>, vector<2x1x32xf32>
    %37 = vector.shape_cast %36 : vector<2x1x32xf32> to vector<2x32xf32>
    %c4_38 = arith.constant 4 : index
    %c0_39 = arith.constant 0 : index
    %c0_40 = arith.constant 0 : index
    %38 = vector.load %arg1[%c4_38, %c0_39, %c0_40] : memref<8x32x32xf32, #tpu.memory_space<vmem>>, vector<1x32x32xf32>
    %39 = vector.shape_cast %38 : vector<1x32x32xf32> to vector<32x32xf32>
    %cst_41 = arith.constant dense<0.000000e+00> : vector<2x32xf32>
    %40 = tpu.matmul %37, %39, %cst_41 {dimension_numbers = #tpu.dot_dimension_numbers<[1], [1], [0], [0], [0, 0, 1, 0], [], []>} : vector<2x32xf32>, vector<32x32xf32>, vector<2x32xf32> -> vector<2x32xf32>
    %c4_42 = arith.constant 4 : index
    %c0_43 = arith.constant 0 : index
    %41 = vector.load %arg2[%c4_42, %c0_43] : memref<8x32xf32, #tpu.memory_space<vmem>>, vector<1x32xf32>
    %42 = vector.broadcast %41 : vector<1x32xf32> to vector<2x32xf32>
    %43 = arith.addf %40, %42 : vector<2x32xf32>
    %c0_44 = arith.constant 0 : index
    %c128 = arith.constant 128 : index
    %44 = vector.load %arg3[%c0_44, %c128] : memref<2x256xf32, #tpu.memory_space<vmem>>, vector<2x32xf32>
    tpu.vector_store %arg3[%c0_44, %c128], %43 {strides = array<i32>} : memref<2x256xf32, #tpu.memory_space<vmem>>, vector<2x32xf32>,
    %c0_45 = arith.constant 0 : index
    %c5 = arith.constant 5 : index
    %c0_46 = arith.constant 0 : index
    %45 = vector.load %arg0[%c0_45, %c5, %c0_46] : memref<2x8x32xf32, #tpu.memory_space<vmem>>, vector<2x1x32xf32>
    %46 = vector.shape_cast %45 : vector<2x1x32xf32> to vector<2x32xf32>
    %c5_47 = arith.constant 5 : index
    %c0_48 = arith.constant 0 : index
    %c0_49 = arith.constant 0 : index
    %47 = vector.load %arg1[%c5_47, %c0_48, %c0_49] : memref<8x32x32xf32, #tpu.memory_space<vmem>>, vector<1x32x32xf32>
    %48 = vector.shape_cast %47 : vector<1x32x32xf32> to vector<32x32xf32>
    %cst_50 = arith.constant dense<0.000000e+00> : vector<2x32xf32>
    %49 = tpu.matmul %46, %48, %cst_50 {dimension_numbers = #tpu.dot_dimension_numbers<[1], [1], [0], [0], [0, 0, 1, 0], [], []>} : vector<2x32xf32>, vector<32x32xf32>, vector<2x32xf32> -> vector<2x32xf32>
    %c5_51 = arith.constant 5 : index
    %c0_52 = arith.constant 0 : index
    %50 = vector.load %arg2[%c5_51, %c0_52] : memref<8x32xf32, #tpu.memory_space<vmem>>, vector<1x32xf32>
    %51 = vector.broadcast %50 : vector<1x32xf32> to vector<2x32xf32>
    %52 = arith.addf %49, %51 : vector<2x32xf32>
    %c0_53 = arith.constant 0 : index
    %c160 = arith.constant 160 : index
    %53 = vector.load %arg3[%c0_53, %c160] : memref<2x256xf32, #tpu.memory_space<vmem>>, vector<2x32xf32>
    tpu.vector_store %arg3[%c0_53, %c160], %52 {strides = array<i32>} : memref<2x256xf32, #tpu.memory_space<vmem>>, vector<2x32xf32>,
    %c0_54 = arith.constant 0 : index
    %c6 = arith.constant 6 : index
    %c0_55 = arith.constant 0 : index
    %54 = vector.load %arg0[%c0_54, %c6, %c0_55] : memref<2x8x32xf32, #tpu.memory_space<vmem>>, vector<2x1x32xf32>
    %55 = vector.shape_cast %54 : vector<2x1x32xf32> to vector<2x32xf32>
    %c6_56 = arith.constant 6 : index
    %c0_57 = arith.constant 0 : index
    %c0_58 = arith.constant 0 : index
    %56 = vector.load %arg1[%c6_56, %c0_57, %c0_58] : memref<8x32x32xf32, #tpu.memory_space<vmem>>, vector<1x32x32xf32>
    %57 = vector.shape_cast %56 : vector<1x32x32xf32> to vector<32x32xf32>
    %cst_59 = arith.constant dense<0.000000e+00> : vector<2x32xf32>
    %58 = tpu.matmul %55, %57, %cst_59 {dimension_numbers = #tpu.dot_dimension_numbers<[1], [1], [0], [0], [0, 0, 1, 0], [], []>} : vector<2x32xf32>, vector<32x32xf32>, vector<2x32xf32> -> vector<2x32xf32>
    %c6_60 = arith.constant 6 : index
    %c0_61 = arith.constant 0 : index
    %59 = vector.load %arg2[%c6_60, %c0_61] : memref<8x32xf32, #tpu.memory_space<vmem>>, vector<1x32xf32>
    %60 = vector.broadcast %59 : vector<1x32xf32> to vector<2x32xf32>
    %61 = arith.addf %58, %60 : vector<2x32xf32>
    %c0_62 = arith.constant 0 : index
    %c192 = arith.constant 192 : index
    %62 = vector.load %arg3[%c0_62, %c192] : memref<2x256xf32, #tpu.memory_space<vmem>>, vector<2x32xf32>
    tpu.vector_store %arg3[%c0_62, %c192], %61 {strides = array<i32>} : memref<2x256xf32, #tpu.memory_space<vmem>>, vector<2x32xf32>,
    %c0_63 = arith.constant 0 : index
    %c7 = arith.constant 7 : index
    %c0_64 = arith.constant 0 : index
    %63 = vector.load %arg0[%c0_63, %c7, %c0_64] : memref<2x8x32xf32, #tpu.memory_space<vmem>>, vector<2x1x32xf32>
    %64 = vector.shape_cast %63 : vector<2x1x32xf32> to vector<2x32xf32>
    %c7_65 = arith.constant 7 : index
    %c0_66 = arith.constant 0 : index
    %c0_67 = arith.constant 0 : index
    %65 = vector.load %arg1[%c7_65, %c0_66, %c0_67] : memref<8x32x32xf32, #tpu.memory_space<vmem>>, vector<1x32x32xf32>
    %66 = vector.shape_cast %65 : vector<1x32x32xf32> to vector<32x32xf32>
    %cst_68 = arith.constant dense<0.000000e+00> : vector<2x32xf32>
    %67 = tpu.matmul %64, %66, %cst_68 {dimension_numbers = #tpu.dot_dimension_numbers<[1], [1], [0], [0], [0, 0, 1, 0], [], []>} : vector<2x32xf32>, vector<32x32xf32>, vector<2x32xf32> -> vector<2x32xf32>
    %c7_69 = arith.constant 7 : index
    %c0_70 = arith.constant 0 : index
    %68 = vector.load %arg2[%c7_69, %c0_70] : memref<8x32xf32, #tpu.memory_space<vmem>>, vector<1x32xf32>
    %69 = vector.broadcast %68 : vector<1x32xf32> to vector<2x32xf32>
    %70 = arith.addf %67, %69 : vector<2x32xf32>
    %c0_71 = arith.constant 0 : index
    %c224 = arith.constant 224 : index
    %71 = vector.load %arg3[%c0_71, %c224] : memref<2x256xf32, #tpu.memory_space<vmem>>, vector<2x32xf32>
    tpu.vector_store %arg3[%c0_71, %c224], %70 {strides = array<i32>} : memref<2x256xf32, #tpu.memory_space<vmem>>, vector<2x32xf32>,
    return
  }
}

</mosaic_0001>

<bundles_post_ra>
// kernel: tpu_custom_call.1
= control target key start
LH: loop header
LB: loop body
LE: loop exit
PB: predicated region body
PF: predicated region fallthrough
CT: control target
= control target key end

     0   :  { %8 = vsyncpa [#allocation3], 0  ;;  %s1472_s0 = inlined_call_operand.hbm [shape: f32[2,8,32], index: 0, kind: input, shape index: {}]   ;;  %s1473_s1 = inlined_call_operand.hbm [shape: f32[8,32,32], index: 1, kind: input, shape index: {}]   ;;  %s1474_s2 = inlined_call_operand.hbm [shape: f32[8,32], index: 2, kind: input, shape index: {}]   ;;  %s1475_s3 = inlined_call_operand.hbm [shape: f32[2,256], index: 3, kind: output, shape index: {}]  }
   0x1   :  { %9 = vsyncpa [#allocation6], 0 }
   0x2   :  { %10 = vsyncpa [#allocation4], 0  ;;  %s1296_s12 = smov [#allocation5]   ;;  %s1297_s14 = smov [#allocation2]  }
   0x3   :  { %s28_s13 = sshll.u32 %s1296_s12, 4  ;;  %s16_s15 = sshll.u32 %s1297_s14, 4  ;;  %s29_s13 = int_to_ptr.vmem [resolvable:$true] %s28_s13  ;;  %s1329_s15 = int_to_ptr.vmem [resolvable:$true] %s16_s15 }
   0x4   :  { %s1202_s18 = scalar_lea.hbm %s1473_s1, 4096 }
   0x5   :  { %p1203_p0 = scmp.ne.s32.totalorder %s1473_s1, %s1202_s18  ;;  %p1206_p1 = scmp.lt.u32.totalorder %s1202_s18, %s1473_s1 }
   0x7   :  { %p1208_p2 = pnand %p1206_p1, %p1203_p0 }
   0x9   :  { %1211 = shalt.err (!%p1208_p2)
}
   0xa   :  { %s1212_s23 = scalar_lea.vmem %s29_s13, 4096  ;;  %p1217_p4 = scmp.lt.s32.totalorder %s29_s13, %s29_s13 }
   0xb   :  { %p1213_p3 = scmp.ne.s32.totalorder %s29_s13, %s1212_s23  ;;  %p1218_p5 = scmp.lt.s32.totalorder %s1212_s23, %s1212_s23 }
   0xd   :  { %p1219_p6 = por %p1218_p5, %p1217_p4 }
   0xf   :  { %p1220_p7 = pnand %p1219_p6, %p1213_p3 }
  0x11   :  { %1223 = shalt.err (!%p1220_p7)
}
  0x12   :  { %s1298_s24 = smov 128   ;;  %s1299_s25 = smov 8  }
  0x13   :  { %34 = dma.hbm_to_vmem [thread:$0]  %s1473_s1, 4096, %s29_s13, [#allocation6], %s1298_s24, %s1298_s24, %s1299_s25  }
  0x14   :  { %s1224_s30 = scalar_lea.hbm %s1472_s0, 256 }
  0x15   :  { %p1225_p8 = scmp.ne.s32.totalorder %s1472_s0, %s1224_s30  ;;  %p1228_p9 = scmp.lt.u32.totalorder %s1224_s30, %s1472_s0 }
  0x17   :  { %p1230_p10 = pnand %p1228_p9, %p1225_p8 }
  0x19   :  { %1233 = shalt.err (!%p1230_p10)
}
  0x1a   :  { %s1234_s8 = scalar_lea.vmem %s1329_s15, 256  ;;  %p1239_p12 = scmp.lt.s32.totalorder %s1329_s15, %s1329_s15 }
  0x1b   :  { %p1235_p11 = scmp.ne.s32.totalorder %s1329_s15, %s1234_s8  ;;  %p1240_p13 = scmp.lt.s32.totalorder %s1234_s8, %s1234_s8 }
  0x1d   :  { %p1241_p0 = por %p1240_p13, %p1239_p12 }
  0x1f   :  { %p1242_p1 = pnand %p1241_p0, %p1235_p11 }
  0x21   :  { %1245 = shalt.err (!%p1242_p1)
}
  0x22   :  { %22 = dma.hbm_to_vmem [thread:$0]  %s1472_s0, 256, %s1329_s15, [#allocation3], %s1298_s24, %s1298_s24, %s1299_s25  }
  0x23   :  { %s1300_s10 = smov [#allocation7]   ;;  %s1246_s14 = scalar_lea.hbm %s1474_s2, 128 }
  0x24   :  { %s41_s11 = sshll.u32 %s1300_s10, 4  ;;  %p1247_p2 = scmp.ne.s32.totalorder %s1474_s2, %s1246_s14  ;;  %s42_s11 = int_to_ptr.vmem [resolvable:$true] %s41_s11 }
  0x25   :  { %p1250_p3 = scmp.lt.u32.totalorder %s1246_s14, %s1474_s2 }
  0x27   :  { %p1252_p4 = pnand %p1250_p3, %p1247_p2 }
  0x29   :  { %1255 = shalt.err (!%p1252_p4)
}
  0x2a   :  { %s1256_s20 = scalar_lea.vmem %s42_s11, 128  ;;  %p1261_p6 = scmp.lt.s32.totalorder %s42_s11, %s42_s11 }
  0x2b   :  { %p1257_p5 = scmp.ne.s32.totalorder %s42_s11, %s1256_s20  ;;  %p1262_p7 = scmp.lt.s32.totalorder %s1256_s20, %s1256_s20 }
  0x2d   :  { %p1263_p8 = por %p1262_p7, %p1261_p6 }
  0x2f   :  { %p1264_p9 = pnand %p1263_p8, %p1257_p5 }
  0x31   :  { %1267 = shalt.err (!%p1264_p9)
}
  0x32   :  { %44 = dma.hbm_to_vmem [thread:$0]  %s1474_s2, 128, %s42_s11, [#allocation6]  }
  0x33   :  { %1290 = dma.done.wait [#allocation3], 256  }
  0x34   :  { %1291 = vsyncadd [#allocation3], 4294967040 }
  0x35   :  { %1292 = dma.done.wait [#allocation6], 4224  }
  0x36   :  { %1293 = vsyncadd [#allocation6], 4294963072  ;;  %v1301_v0 = vmov 0.0|0.0   ;;  %vm1302_vm0 = vmmov 0   ;;  %v1303_v1 = vmov 0.0   ;;  %vm70_vm1 = vcmask 261120  }
  0x37   :  { %1125 = vmatprep.subr.bf16.mxu0 %v1301_v0  ;;  %1133 = vmatprep.subr.bf16.mxu1 %v1301_v0  ;;  %vm1380_vm2 = vmpackc.low %vm70_vm1, %vm70_vm1  ;;  %v56_v3 = vld [vmem:[#allocation5] sm:$0xff]  ;;  %v57_v4 = vld [vmem:[#allocation5 + $0x8] sm:$0xff]  ;;  %vm68_vm3 = vcmask 1041409   ;;  %vm155_vm4 = vcmask 254976   ;;  %s1305_s2 = smov 32   ;;  %s1306_s21 = smov 64  }
  0x38   :  { %1045 = vmatprep.mubr.msk.f32.mxu0 %vm1302_vm0, %v1303_v1  ;;  %1056 = vmatprep.mubr.msk.f32.mxu1 %vm1302_vm0, %v1303_v1  ;;  %v160_v5 = vld [vmem:[#allocation5 + $0x20] sm:$0xff]  ;;  %v1126_v6 = vpack.c.bf16 %v57_v4, %v56_v3  ;;  %v161_v7 = vld [vmem:[#allocation5 + $0x28] sm:$0xff]  ;;  %v58_v9 = vld [vmem:[#allocation5 + $0x10] sm:$0xff]  ;;  %s1307_s22 = smov 96   ;;  %vm268_vm5 = vcmask 517376   ;;  %vm381_vm6 = vcmask 779776  }
  0x39   :  { %v1134_v8 = vpack.c.bf16 %v161_v7, %v160_v5  ;;  %v59_v10 = vld [vmem:[#allocation5 + $0x18] sm:$0xff]  ;;  %v162_v11 = vld [vmem:[#allocation5 + $0x30] sm:$0xff]  ;;  %v273_v20 = vld [vmem:[#allocation5 + $0x40] sm:$0xff]  ;;  %vm494_vm7 = vcmask 1042176   ;;  %s1308_s23 = smov [#allocation8]  }
  0x3a   :  { %1128 = vmatpush3.bf16.xpose.msk.msra.mxu0 %vm1380_vm2, %v1126_v6  ;;  %v163_v12 = vld [vmem:[#allocation5 + $0x38] sm:$0xff]  ;;  %v1130_v13 = vpack.c.bf16 %v59_v10, %v58_v9  ;;  %v54_v18 = vld [vmem:[#allocation2] sm:$0x1]  ;;  %v274_v21 = vld [vmem:[#allocation5 + $0x48] sm:$0xff]  ;;  %s939_s24 = sshll.u32 %s1308_s23, 4  ;;  %s940_s24 = int_to_ptr.vmem [resolvable:$true] %s939_s24 }
  0x3b   :  { %1136 = vmatpush3.bf16.xpose.msk.msra.mxu1 %vm1380_vm2, %v1134_v8  ;;  %1129 = vmatprep.subr.bf16.mxu0 %v1301_v0  ;;  %v1138_v14 = vpack.c.bf16 %v163_v12, %v162_v11  ;;  %v55_v15 = vld [vmem:[#allocation2 + $0x8] sm:$0x1]  ;;  %v158_v16 = vld [vmem:[#allocation2 + $0x9] sm:$0x1]  ;;  %v157_v22 = vld [vmem:[#allocation2 + $0x1] sm:$0x1]  ;;  %v1142_v26 = vpack.c.bf16 %v274_v21, %v273_v20  ;;  %p1273_p11 = scmp.lt.s32.totalorder %s940_s24, %s940_s24 }
  0x3c   :  { %1137 = vmatprep.subr.bf16.mxu1 %v1301_v0  ;;  %v67_v17 = vrot.slane %v55_v15, 7  ;;  %v171_v19 = vrot.slane %v158_v16, 7  ;;  %v386_v23 = vld [vmem:[#allocation5 + $0x60] sm:$0xff]  ;;  %v387_v24 = vld [vmem:[#allocation5 + $0x68] sm:$0xff]  ;;  %v275_v29 = vld [vmem:[#allocation5 + $0x50] sm:$0xff]  ;;  %s1268_s25 = scalar_lea.vmem %s940_s24, 64 }
  0x3d   :  { %v1150_v28 = vpack.c.bf16 %v387_v24, %v386_v23  ;;  %v276_v30 = vld [vmem:[#allocation5 + $0x58] sm:$0xff]  ;;  %v388_v31 = vld [vmem:[#allocation5 + $0x70] sm:$0xff]  ;;  %v499_v40 = vld [vmem:[#allocation5 + $0x80] sm:$0xff]  ;;  %p1269_p10 = scmp.ne.s32.totalorder %s940_s24, %s1268_s25  ;;  %p1274_p12 = scmp.lt.s32.totalorder %s1268_s25, %s1268_s25 }
  0x3e   :  { %v69_v25 = vsel %vm68_vm3, %v67_v17, %v54_v18  ;;  %v172_v27 = vsel %vm68_vm3, %v171_v19, %v157_v22  ;;  %v389_v32 = vld [vmem:[#allocation5 + $0x78] sm:$0xff]  ;;  %v1146_v33 = vpack.c.bf16 %v276_v30, %v275_v29  ;;  %v270_v38 = vld [vmem:[#allocation2 + $0x2] sm:$0x1]  ;;  %v500_v41 = vld [vmem:[#allocation5 + $0x88] sm:$0xff]  ;;  %v261_v22 = vlaneseq }
  0x3f   :  { %v1154_v34 = vpack.c.bf16 %v389_v32, %v388_v31  ;;  %v271_v35 = vld [vmem:[#allocation2 + $0xa] sm:$0x1]  ;;  %v384_v36 = vld [vmem:[#allocation2 + $0xb] sm:$0x1]  ;;  %v383_v42 = vld [vmem:[#allocation2 + $0x3] sm:$0x1]  ;;  %v1158_v46 = vpack.c.bf16 %v500_v41, %v499_v40  ;;  %p1275_p13 = por %p1274_p12, %p1273_p11 }
  0x40   :  { %v284_v37 = vrot.slane %v271_v35, 7  ;;  %v397_v39 = vrot.slane %v384_v36, 7  ;;  %v600_v43 = vld [vmem:[#allocation5 + $0xa0] sm:$0xff]  ;;  %v601_v44 = vld [vmem:[#allocation5 + $0xa8] sm:$0xff]  ;;  %v501_v49 = vld [vmem:[#allocation5 + $0x90] sm:$0xff]  ;;  %v262_v24 = vshrl.u32 %v261_v22, 7 }
  0x41   :  { %v1166_v48 = vpack.c.bf16 %v601_v44, %v600_v43  ;;  %v502_v50 = vld [vmem:[#allocation5 + $0x98] sm:$0xff]  ;;  %v602_v51 = vld [vmem:[#allocation5 + $0xb0] sm:$0xff]  ;;  %v712_v60 = vld [vmem:[#allocation5 + $0xc0] sm:$0xff]  ;;  %p1276_p0 = pnand %p1275_p13, %p1269_p10 }
  0x42   :  { %1132 = vmatpush3.bf16.xpose.msk.msra.mxu0 %vm1380_vm2, %v1130_v13  ;;  %v285_v45 = vsel %vm68_vm3, %v284_v37, %v270_v38  ;;  %v398_v47 = vsel %vm68_vm3, %v397_v39, %v383_v42  ;;  %v603_v52 = vld [vmem:[#allocation5 + $0xb8] sm:$0xff]  ;;  %v1162_v53 = vpack.c.bf16 %v502_v50, %v501_v49  ;;  %v496_v58 = vld [vmem:[#allocation2 + $0x4] sm:$0x1]  ;;  %v713_v61 = vld [vmem:[#allocation5 + $0xc8] sm:$0xff] }
  0x43   :  { %1140 = vmatpush3.bf16.xpose.msk.msra.mxu1 %vm1380_vm2, %v1138_v14  ;;  %1141 = vmatprep.subr.bf16.mxu0 %v1301_v0  ;;  %v1170_v54 = vpack.c.bf16 %v603_v52, %v602_v51  ;;  %v497_v55 = vld [vmem:[#allocation2 + $0xc] sm:$0x1]  ;;  %v598_v56 = vld [vmem:[#allocation2 + $0xd] sm:$0x1]  ;;  %v597_v62 = vld [vmem:[#allocation2 + $0x5] sm:$0x1]  ;;  %v1174_v5 = vpack.c.bf16 %v713_v61, %v712_v60 }
  0x44   :  { %1149 = vmatprep.subr.bf16.mxu1 %v1301_v0  ;;  %v510_v57 = vrot.slane %v497_v55, 7  ;;  %v611_v59 = vrot.slane %v598_v56, 7  ;;  %v824_v63 = vld [vmem:[#allocation5 + $0xe0] sm:$0xff]  ;;  %v825_v3 = vld [vmem:[#allocation5 + $0xe8] sm:$0xff]  ;;  %v714_v8 = vld [vmem:[#allocation5 + $0xd0] sm:$0xff] }
  0x45   :  { %v1182_v7 = vpack.c.bf16 %v825_v3, %v824_v63  ;;  %v715_v9 = vld [vmem:[#allocation5 + $0xd8] sm:$0xff]  ;;  %v826_v10 = vld [vmem:[#allocation5 + $0xf0] sm:$0xff]  ;;  %v973_v41 = vld [vmem:[#allocation7 + $0x4] ss:$0 sm:$0xff] }
  0x46   :  { %v511_v4 = vsel %vm68_vm3, %v510_v57, %v496_v58  ;;  %v612_v6 = vsel %vm68_vm3, %v611_v59, %v597_v62  ;;  %v827_v11 = vld [vmem:[#allocation5 + $0xf8] sm:$0xff]  ;;  %v1178_v12 = vpack.c.bf16 %v715_v9, %v714_v8  ;;  %v821_v18 = vld [vmem:[#allocation2 + $0x7] sm:$0x1]  ;;  %v979_v42 = vld [vmem:[#allocation7 + $0x5] ss:$0 sm:$0xff] }
  0x47   :  { %v1186_v13 = vpack.c.bf16 %v827_v11, %v826_v10  ;;  %v710_v14 = vld [vmem:[#allocation2 + $0xe] sm:$0x1]  ;;  %v822_v15 = vld [vmem:[#allocation2 + $0xf] sm:$0x1]  ;;  %v967_v44 = vld [vmem:[#allocation7 + $0x3] ss:$0 sm:$0xff] }
  0x48   :  { %v723_v16 = vrot.slane %v710_v14, 7  ;;  %v835_v17 = vrot.slane %v822_v15, 7 }
  0x49   :  { %1046 = vmatmul.mubr.msk.f32.vlgmr.msra.gmra.mrb[0].mxu0 %vm70_vm1, %v69_v25  ;;  %v949_v25 = vld [vmem:[#allocation7] ss:$0 sm:$0xff] }
  0x4a   :  { %1057 = vmatmul.mubr.msk.f32.vlgmr.msra.gmra.mrb[0].mxu1 %vm70_vm1, %v172_v27  ;;  %1144 = vmatpush3.bf16.xpose.msk.msra.mxu0 %vm1380_vm2, %v1142_v26  ;;  %v836_v20 = vsel %vm68_vm3, %v835_v17, %v821_v18  ;;  %v955_v26 = vld [vmem:[#allocation7 + $0x1] ss:$0 sm:$0xff] }
  0x4b   :  { %1152 = vmatpush3.bf16.xpose.msk.msra.mxu1 %vm1380_vm2, %v1150_v28  ;;  %1145 = vmatprep.subr.bf16.mxu0 %v1301_v0 }
  0x4c   :  { %1153 = vmatprep.subr.bf16.mxu1 %v1301_v0  ;;  %1067 = vmatprep.mubr.msk.f32.mxu0 %vm1302_vm0, %v1303_v1 }
  0x4d   :  { %1078 = vmatprep.mubr.msk.f32.mxu1 %vm1302_vm0, %v1303_v1 }
  0x52   :  { %1148 = vmatpush3.bf16.xpose.msk.msra.mxu0 %vm1380_vm2, %v1146_v33 }
  0x53   :  { %1156 = vmatpush3.bf16.xpose.msk.msra.mxu1 %vm1380_vm2, %v1154_v34  ;;  %1157 = vmatprep.subr.bf16.mxu0 %v1301_v0  ;;  %v961_v34 = vld [vmem:[#allocation7 + $0x2] ss:$0 sm:$0xff] }
  0x54   :  { %1165 = vmatprep.subr.bf16.mxu1 %v1301_v0 }
  0x59   :  { %1068 = vmatmul.mubr.msk.f32.vlgmr.msra.gmra.mrb[2].mxu0 %vm70_vm1, %v285_v45 }
  0x5a   :  { %1079 = vmatmul.mubr.msk.f32.vlgmr.msra.gmra.mrb[2].mxu1 %vm70_vm1, %v398_v47  ;;  %1160 = vmatpush3.bf16.xpose.msk.msra.mxu0 %vm1380_vm2, %v1158_v46 }
  0x5b   :  { %1168 = vmatpush3.bf16.xpose.msk.msra.mxu1 %vm1380_vm2, %v1166_v48  ;;  %1161 = vmatprep.subr.bf16.mxu0 %v1301_v0 }
  0x5c   :  { %1169 = vmatprep.subr.bf16.mxu1 %v1301_v0  ;;  %1089 = vmatprep.mubr.msk.f32.mxu0 %vm1302_vm0, %v1303_v1 }
  0x5d   :  { %1100 = vmatprep.mubr.msk.f32.mxu1 %vm1302_vm0, %v1303_v1 }
  0x62   :  { %1164 = vmatpush3.bf16.xpose.msk.msra.mxu0 %vm1380_vm2, %v1162_v53  ;;  %v985_v53 = vld [vmem:[#allocation7 + $0x6] ss:$0 sm:$0xff] }
  0x63   :  { %1172 = vmatpush3.bf16.xpose.msk.msra.mxu1 %vm1380_vm2, %v1170_v54  ;;  %1173 = vmatprep.subr.bf16.mxu0 %v1301_v0  ;;  %v991_v54 = vld [vmem:[#allocation7 + $0x7] ss:$0 sm:$0xff] }
  0x64   :  { %1181 = vmatprep.subr.bf16.mxu1 %v1301_v0 }
  0x69   :  { %1090 = vmatmul.mubr.msk.f32.vlgmr.msra.gmra.mrb[4].mxu0 %vm70_vm1, %v511_v4 }
  0x6a   :  { %1101 = vmatmul.mubr.msk.f32.vlgmr.msra.gmra.mrb[4].mxu1 %vm70_vm1, %v612_v6  ;;  %1176 = vmatpush3.bf16.xpose.msk.msra.mxu0 %vm1380_vm2, %v1174_v5 }
  0x6b   :  { %1184 = vmatpush3.bf16.xpose.msk.msra.mxu1 %vm1380_vm2, %v1182_v7  ;;  %1177 = vmatprep.subr.bf16.mxu0 %v1301_v0 }
  0x6c   :  { %1185 = vmatprep.subr.bf16.mxu1 %v1301_v0  ;;  %1111 = vmatprep.mubr.msk.f32.mxu0 %vm1302_vm0, %v1303_v1  ;;  %v709_v0 = vld [vmem:[#allocation2 + $0x6] sm:$0x1] }
  0x6d   :  { %1122 = vmatprep.mubr.msk.f32.mxu1 %vm1302_vm0, %v1303_v1  ;;  %v724_v19 = vsel %vm68_vm3, %v723_v16, %v709_v0  ;;  %v1304_v1 = vmov 1983009808  }
  0x6e   :  { %v259_v21 = vunpack.c.l.s4 %v1304_v1 }
  0x70   :  { %v260_v23 = vunpack.c.0.s8 %v259_v21 }
  0x72   :  { %1180 = vmatpush3.bf16.xpose.msk.msra.mxu0 %vm1380_vm2, %v1178_v12  ;;  %v263_v27 = vsub.s32 %v260_v23, %v262_v24 }
  0x73   :  { %1188 = vmatpush3.bf16.xpose.msk.msra.mxu1 %vm1380_vm2, %v1186_v13 }
  0x79   :  { %1112 = vmatmul.mubr.msk.f32.vlgmr.msra.gmra.mrb[6].mxu0 %vm70_vm1, %v724_v19 }
  0x7a   :  { %1123 = vmatmul.mubr.msk.f32.vlgmr.msra.gmra.mrb[6].mxu1 %vm70_vm1, %v836_v20 }
 0x11c   :  { %v151_v2 = vpop.f32.mrb[0].mxu0 }
 0x11d   :  { %v152_v28 = vadd.f32 %v949_v25, %v151_v2  ;;  %v1047_v29 = vpop.f32.mrb[1].mxu0  ;;  %v253_v30 = vpop.f32.mrb[0].mxu1 }
 0x11e   :  { %v254_v31 = vadd.f32 %v955_v26, %v253_v30  ;;  %v1058_v32 = vpop.f32.mrb[1].mxu1 }
 0x11f   :  { %156 = vst.msk [vmem:[#allocation8] sm:$0x3] %vm155_vm4, %v152_v28 }
 0x120   :  { %v264_v33 = vrot.slane %v254_v31, %v263_v27 }
 0x122   :  { %265 = vrot.lane.b32.xlu0 %v264_v33, %s1305_s2 }
 0x12c   :  { %v366_v35 = vpop.f32.mrb[2].mxu0 }
 0x12d   :  { %v367_v36 = vadd.f32 %v961_v34, %v366_v35  ;;  %v1069_v37 = vpop.f32.mrb[3].mxu0  ;;  %v479_v38 = vpop.f32.mrb[2].mxu1 }
 0x12e   :  { %v1080_v39 = vpop.f32.mrb[3].mxu1  ;;  %v480_v50 = vadd.f32 %v967_v44, %v479_v38 }
 0x12f   :  { %v377_v40 = vrot.slane %v367_v36, %v263_v27 }
 0x130   :  { %v490_v52 = vrot.slane %v480_v50, %v263_v27 }
 0x131   :  { %378 = vrot.lane.b32.xlu1 %v377_v40, %s1306_s21 }
 0x13c   :  { %v592_v43 = vpop.f32.mrb[4].mxu0 }
 0x13d   :  { %v593_v45 = vadd.f32 %v973_v41, %v592_v43  ;;  %v693_v46 = vpop.f32.mrb[4].mxu1  ;;  %v1091_v47 = vpop.f32.mrb[5].mxu0 }
 0x13e   :  { %v694_v48 = vadd.f32 %v979_v42, %v693_v46  ;;  %v1102_v49 = vpop.f32.mrb[5].mxu1 }
 0x13f   :  { %596 = vst.msk [vmem:[#allocation8 + $0x2] sm:$0x3] %vm155_vm4, %v593_v45 }
 0x140   :  { %v704_v51 = vrot.slane %v694_v48, %v263_v27 }
 0x142   :  { %705 = vrot.lane.b32.xlu0 %v704_v51, %s1305_s2 }
 0x146   :  { %491 = vrot.lane.b32.xlu0 %v490_v52, %s1307_s22 }
 0x14c   :  { %v805_v55 = vpop.f32.mrb[6].mxu0 }
 0x14d   :  { %v806_v56 = vadd.f32 %v985_v53, %v805_v55  ;;  %v1113_v57 = vpop.f32.mrb[7].mxu0  ;;  %v917_v58 = vpop.f32.mrb[6].mxu1 }
 0x14e   :  { %v918_v59 = vadd.f32 %v991_v54, %v917_v58  ;;  %v1124_v60 = vpop.f32.mrb[7].mxu1 }
 0x14f   :  { %v816_v61 = vrot.slane %v806_v56, %v263_v27 }
 0x150   :  { %v928_v62 = vrot.slane %v918_v59, %v263_v27 }
 0x151   :  { %817 = vrot.lane.b32.xlu1 %v816_v61, %s1306_s21 }
 0x155   :  { %929 = vrot.lane.b32.xlu1 %v928_v62, %s1307_s22 }
 0x194   :  { %v266_v63 = vpop.permute.xlu0 %265 }
 0x195   :  { %269 = vst.msk [vmem:[#allocation8] sm:$0x3] %vm268_vm5, %v266_v63 }
 0x1a3   :  { %v379_v3 = vpop.permute.xlu1 %378 }
 0x1a4   :  { %382 = vst.msk [vmem:[#allocation8] sm:$0x3] %vm381_vm6, %v379_v3 }
 0x1b4   :  { %v706_v4 = vpop.permute.xlu0 %705 }
 0x1b5   :  { %708 = vst.msk [vmem:[#allocation8 + $0x2] sm:$0x3] %vm268_vm5, %v706_v4 }
 0x1b8   :  { %v492_v5 = vpop.permute.xlu0 %491 }
 0x1b9   :  { %495 = vst.msk [vmem:[#allocation8] sm:$0x3] %vm494_vm7, %v492_v5 }
 0x1c3   :  { %v818_v6 = vpop.permute.xlu1 %817 }
 0x1c4   :  { %820 = vst.msk [vmem:[#allocation8 + $0x2] sm:$0x3] %vm381_vm6, %v818_v6 }
 0x1c7   :  { %v930_v7 = vpop.permute.xlu1 %929 }
 0x1c8   :  { %932 = vst.msk [vmem:[#allocation8 + $0x2] sm:$0x3] %vm494_vm7, %v930_v7 }
 0x1c9   :  { %1279 = shalt.err (!%p1276_p0)
}
 0x1ca   :  { %s1280_s28 = scalar_lea.hbm %s1475_s3, 64 }
 0x1cb   :  { %p1281_p1 = scmp.ne.s32.totalorder %s1475_s3, %s1280_s28  ;;  %p1284_p2 = scmp.lt.u32.totalorder %s1280_s28, %s1475_s3 }
 0x1cd   :  { %p1286_p3 = pnand %p1284_p2, %p1281_p1 }
 0x1cf   :  { %1289 = shalt.err (!%p1286_p3)
}
 0x1d0   :  { %942 = dma.vmem_to_hbm [thread:$0]  %s940_s24, 64, %s1475_s3, [#allocation4]  }
 0x1d1   :  { %1294 = dma.done.wait [#allocation4], 64  }
 0x1d2   :  { %1295 = vsyncadd [#allocation4], 4294967232 }
 0x1d3   :  { %946 = vsyncpa [#allocation3], 1 }
 0x1d4   :  { %947 = vsyncpa [#allocation6], 1 }
 0x1d5   :  { %948 = vsyncpa [#allocation4], 1 }

</bundles_post_ra>
